<compile_context>
chip_gen: v6e
topology: v6e:2x2x1
jax: 0.10.0
libtpu: 0.0.40
codegen_flags: <defaults>
</compile_context>

<pallas_src>
import functools

import jax
import jax.numpy as jnp
from jax.experimental import pallas as pl
from jax.experimental.pallas import tpu as pltpu

_LANE = 128


def _round_up(a: int, b: int) -> int:
    return (a + b - 1) // b * b


def _round_down(a: int, b: int) -> int:
    return (a // b) * b


def _sublane_multiple(dtype) -> int:
    # Native sublane packing: f32 -> 8 rows/vreg, bf16 -> 16, int8/fp8 -> 32.
    itemsize = jnp.dtype(dtype).itemsize
    return 8 * max(1, 4 // itemsize)


def _gap_kernel_single(x_ref, o_ref, *, inv_hw: float):
    # hw fits in a single block: direct reduce, no scratch, no guards.
    o_ref[...] = (
        jnp.sum(x_ref[...], axis=-1, keepdims=True, dtype=jnp.float32) * inv_hw
    ).astype(o_ref.dtype)


def _gap_kernel_tiled(x_ref, o_ref, acc_ref, *, inv_hw: float, hw: int,
                      tile_hw: int, ragged: bool):
    # x_ref: (tile_r, tile_hw) tile; o_ref: (tile_r, 1); acc_ref: (tile_r, 1) f32
    # resident across the hw-reduction grid axis (P3 init/finalize).
    k = pl.program_id(1)

    @pl.when(k == 0)
    def _():
        acc_ref[...] = jnp.zeros_like(acc_ref)

    x = x_ref[...]
    if ragged:
        # Final hw block extends past hw: those columns were never DMA'd (stale
        # VMEM), mask them to zero instead of padding the array in HBM.
        col = k * tile_hw + jax.lax.broadcasted_iota(jnp.int32, x.shape, 1)
        x = jnp.where(col < hw, x, jnp.zeros((), x.dtype))

    acc_ref[...] += jnp.sum(x, axis=-1, keepdims=True, dtype=jnp.float32)

    @pl.when(k == pl.num_programs(1) - 1)
    def _():
        o_ref[...] = (acc_ref[...] * inv_hw).astype(o_ref.dtype)


def global_avg_pool2d(x, *, vmem_budget_bytes: int = 36 << 20):
    """x: (N, C, H, W) -> (N, C, 1, 1), mean over H and W (F.avg_pool2d global)."""
    N, C, H, W = x.shape
    dtype = x.dtype
    rows, hw = N * C, H * W
    elem = jnp.dtype(dtype).itemsize
    row_mult = _sublane_multiple(dtype)

    # Free for contiguous NCHW input; no data movement.
    x2d = x.reshape(rows, hw)

    def lane_bytes(n, itemsize):  # VMEM bytes per row incl. 128-lane padding
        return _round_up(n, _LANE) * itemsize

    # ---- choose tiling -------------------------------------------------------
    # VMEM cost of one minimal row strip at full hw (double-buffered input +
    # double-buffered (row_mult, 1) output block).
    strip_cost = row_mult * (2 * lane_bytes(hw, elem) + 2 * _LANE * elem)
    if strip_cost <= vmem_budget_bytes:
        # Common case: full hw extent in one block, tile rows only.
        tile_hw = hw
        hw_blocks = 1
        per_row = 2 * lane_bytes(hw, elem) + 2 * _LANE * elem
        tile_r = max(row_mult, _round_down(vmem_budget_bytes // per_row, row_mult))
    else:
        # Huge spatial dim: minimal row strip, tile hw in 128-lane multiples,
        # f32 accumulator resident across the hw axis; ragged last hw block is
        # masked in-kernel.
        tile_r = row_mult
        fixed = tile_r * (2 * _LANE * elem + _LANE * 4)  # out bufs + acc scratch
        tile_hw = _round_down(
            max(_LANE, (vmem_budget_bytes - fixed) // (2 * tile_r * elem)), _LANE)
        tile_hw = min(tile_hw, _round_up(hw, _LANE))
        hw_blocks = pl.cdiv(hw, tile_hw)

    # >= 2 row blocks whenever possible so the "parallel" axis shards across
    # both TensorCores on v7x megacore (no-op on v5e/v6e).
    two_tile_cap = max(row_mult, _round_up(pl.cdiv(rows, 2), row_mult))
    tile_r = min(tile_r, two_tile_cap)
    row_blocks = pl.cdiv(rows, tile_r)

    # ---- explicit VMEM limit from the actual (lane-padded) footprints --------
    in_buf = tile_r * lane_bytes(tile_hw, elem)
    out_buf = tile_r * _LANE * elem
    acc_buf = tile_r * _LANE * 4 if hw_blocks > 1 else 0
    vmem_need = 2 * in_buf + 2 * out_buf + acc_buf
    vmem_limit = int(min(max(vmem_need + (4 << 20), 16 << 20), 56 << 20))

    cost = pl.CostEstimate(
        flops=rows * hw,
        transcendentals=0,
        bytes_accessed=rows * hw * elem + rows * elem,
    )

    if hw_blocks == 1:
        kernel = functools.partial(_gap_kernel_single, inv_hw=1.0 / hw)
        grid = (row_blocks,)
        in_specs = [pl.BlockSpec((tile_r, tile_hw), lambda i: (i, 0))]
        out_specs = pl.BlockSpec((tile_r, 1), lambda i: (i, 0))
        scratch_shapes = []
        dim_sem = ("parallel",)
    else:
        ragged = (hw % tile_hw) != 0
        kernel = functools.partial(_gap_kernel_tiled, inv_hw=1.0 / hw, hw=hw,
                                   tile_hw=tile_hw, ragged=ragged)
        grid = (row_blocks, hw_blocks)
        in_specs = [pl.BlockSpec((tile_r, tile_hw), lambda i, k: (i, k))]
        out_specs = pl.BlockSpec((tile_r, 1), lambda i, k: (i, 0))
        scratch_shapes = [pltpu.VMEM((tile_r, 1), jnp.float32)]
        dim_sem = ("parallel", "arbitrary")

    out2d = pl.pallas_call(
        kernel,
        out_shape=jax.ShapeDtypeStruct((rows, 1), dtype),
        grid_spec=pltpu.PrefetchScalarGridSpec(
            num_scalar_prefetch=0,
            grid=grid,
            in_specs=in_specs,
            out_specs=out_specs,
            scratch_shapes=scratch_shapes,
        ),
        compiler_params=pltpu.CompilerParams(
            dimension_semantics=dim_sem,
            vmem_limit_bytes=vmem_limit,
        ),
        cost_estimate=cost,
    )(x2d)

    return out2d.reshape(N, C, 1, 1)


if __name__ == "__main__":
    key = jax.random.PRNGKey(0)

    # 1) Base case (matches the module spec shape): single-block fast path.
    x1 = jax.random.normal(key, (2, 4, 16, 16), dtype=jnp.float32)
    o1 = global_avg_pool2d(x1)
    jax.block_until_ready(o1)
    r1 = jnp.mean(x1, axis=(2, 3), keepdims=True)
    assert o1.shape == (2, 4, 1, 1), o1.shape
    assert jnp.allclose(o1, r1, atol=1e-5, rtol=1e-5)

    # 2) Rows not divisible by the row tile: exercises the partial final row
    #    block (garbage rows clipped on store) and the >=2 row-block cap.
    x2 = jax.random.normal(jax.random.PRNGKey(1), (5, 4, 16, 16), dtype=jnp.float32)
    o2 = global_avg_pool2d(x2)
    jax.block_until_ready(o2)
    r2 = jnp.mean(x2, axis=(2, 3), keepdims=True)
    assert o2.shape == (5, 4, 1, 1), o2.shape
    assert jnp.allclose(o2, r2, atol=1e-5, rtol=1e-5)

    # 3) Tiny VMEM budget forces the spatially-tiled + ragged-hw-mask +
    #    accumulator path at small scale.
    x3 = jax.random.normal(jax.random.PRNGKey(2), (2, 4, 32, 40), dtype=jnp.float32)
    o3 = global_avg_pool2d(x3, vmem_budget_bytes=64 << 10)
    jax.block_until_ready(o3)
    r3 = jnp.mean(x3, axis=(2, 3), keepdims=True)
    assert o3.shape == (2, 4, 1, 1), o3.shape
    assert jnp.allclose(o3, r3, atol=1e-5, rtol=1e-5)

    print("KERNEL_OK")
</pallas_src>

<mosaic_0001>
module attributes {stable_mosaic.version = 11 : i64} {
  func.func @_gap_kernel_single(%arg0: i32, %arg1: memref<8x256xf32, #tpu.memory_space<vmem>>, %arg2: memref<8x1xf32, #tpu.memory_space<vmem>>) attributes {dimension_semantics = [#tpu.dimension_semantics<parallel>], iteration_bounds = array<i64: 1>, scalar_prefetch = 0 : i64, scratch_operands = 0 : i64, tpu.core_type = #tpu.core_type<tc>, window_params = [{transform_indices = @transform_0, window_bounds = array<i64: 8, 256>}, {transform_indices = @transform_1, window_bounds = array<i64: 8, 1>}]} {
    %c0 = arith.constant 0 : index
    %c0_0 = arith.constant 0 : index
    %0 = vector.load %arg1[%c0, %c0_0] : memref<8x256xf32, #tpu.memory_space<vmem>>, vector<8x256xf32>
    %cst = arith.constant dense<0.000000e+00> : vector<8xf32>
    %1 = vector.multi_reduction <add>, %0, %cst [1] : vector<8x256xf32> to vector<8xf32>
    %2 = vector.shape_cast %1 : vector<8xf32> to vector<8x1xf32>
    %cst_1 = arith.constant 3.906250e-03 : f32
    %3 = vector.broadcast %cst_1 : f32 to vector<8x1xf32>
    %4 = arith.mulf %2, %3 : vector<8x1xf32>
    %c0_2 = arith.constant 0 : index
    %c0_3 = arith.constant 0 : index
    %5 = vector.load %arg2[%c0_2, %c0_3] : memref<8x1xf32, #tpu.memory_space<vmem>>, vector<8x1xf32>
    tpu.vector_store %arg2[%c0_2, %c0_3], %4 {strides = array<i32>} : memref<8x1xf32, #tpu.memory_space<vmem>>, vector<8x1xf32>,
    return
  }
  func.func @transform_0(%arg0: i32) -> (i32, i32) {
    %c0_i32 = arith.constant 0 : i32
    %c0_i32_0 = arith.constant 0 : i32
    return %arg0, %c0_i32 : i32, i32
  }
  func.func @transform_1(%arg0: i32) -> (i32, i32) {
    %c0_i32 = arith.constant 0 : i32
    %c0_i32_0 = arith.constant 0 : i32
    return %arg0, %c0_i32 : i32, i32
  }
}

</mosaic_0001>

<bundles_post_ra>
// kernel: tpu_custom_call.1
= control target key start
LH: loop header
LB: loop body
LE: loop exit
PB: predicated region body
PF: predicated region fallthrough
CT: control target
= control target key end

     0   :  { %6 = vsyncpa [#allocation3], 0  ;;  %s56_s6 = smov [#allocation2]   ;;  %s73_s0 = inlined_call_operand.hbm [shape: f32[8,256], index: 0, kind: input, shape index: {}]   ;;  %s74_s1 = inlined_call_operand.vmem [shape: f32[8,1], index: 1, kind: output, shape index: {}]  }
   0x1   :  { %s13_s7 = sshll.u32 %s56_s6, 4  ;;  %s14_s7 = int_to_ptr.vmem [resolvable:$true] %s13_s7 }
   0x2   :  { %s42_s8 = scalar_lea.vmem %s14_s7, 256  ;;  %p47_p1 = scmp.lt.s32.totalorder %s14_s7, %s14_s7 }
   0x3   :  { %p43_p0 = scmp.ne.s32.totalorder %s14_s7, %s42_s8  ;;  %p48_p2 = scmp.lt.s32.totalorder %s42_s8, %s42_s8 }
   0x5   :  { %p49_p3 = por %p48_p2, %p47_p1 }
   0x7   :  { %p50_p4 = pnand %p49_p3, %p43_p0 }
   0x9   :  { %53 = shalt.err (!%p50_p4)
}
   0xa   :  { %16 = dma.hbm_to_vmem [thread:$0]  %s73_s0, 256, %s14_s7, [#allocation3]  }
   0xb   :  { %54 = dma.done.wait [#allocation3], 256  }
   0xc   :  { %55 = vsyncadd [#allocation3], 4294967040  ;;  %v20_v0 = vld [vmem:[#allocation2] sm:$0xff]  ;;  %v21_v1 = vld [vmem:[#allocation2 + $0x8] sm:$0xff]  ;;  %vm26_vm0 = vcmask 7168  }
   0xd   :  { %v22_v2 = vadd.f32 %v21_v1, %v20_v0 }
   0xf   :  { %23 = vadd.xlane.f32.xlu0 %v22_v2 }
  0x98   :  { %v24_v3 = vpop.xlane.xlu0 %23 }
  0x99   :  { %v25_v4 = vmul.f32 0.00390625, %v24_v3 }
  0x9b   :  { %27 = vst.msk [vmem:[%s74_s1] sm:$0xff] %vm26_vm0, %v25_v4 }
  0x9c   :  { %32 = vsyncpa [#allocation3], 1 }

</bundles_post_ra>
